<compile_context>
chip_gen: v6e
topology: v6e:2x2x1
jax: 0.10.0
libtpu: 0.0.40
codegen_flags: <defaults>
</compile_context>

<pallas_src>
import functools

import jax
import jax.numpy as jnp
from jax.experimental import pallas as pl
from jax.experimental.pallas import tpu as pltpu


VMEM_CAP_BYTES = 48 << 20     # stay well under v7x's 64 MiB physical VMEM / core
TILE_BUDGET_BYTES = 32 << 20  # target working-set for automatic row-tile selection


def _round_up(x, m):
    return -(-x // m) * m


def _padded_bytes(shape, dtype):
    """VMEM footprint of an array, rounded up to hardware (sublane, 128-lane) tiles."""
    dt = jnp.dtype(dtype)
    sublane = 8 * max(1, 4 // dt.itemsize)   # 8 for f32, 16 for bf16
    dims = list(shape)
    dims[-1] = _round_up(dims[-1], 128)
    if len(dims) >= 2:
        dims[-2] = _round_up(dims[-2], sublane)
    n = 1
    for d in dims:
        n *= int(d)
    return n * dt.itemsize


def _pick_row_tile(ho, wo, total_bytes_fn, budget, min_tiles):
    """Largest lane-aligned divisor of `ho` that fits the VMEM budget.

    Prefers tiles that yield at least `min_tiles` grid steps along the row axis
    (so a single-image call can still be split across both v7x TensorCores).
    """
    divisors = [d for d in range(ho, 0, -1) if ho % d == 0]
    aligned = [d for d in divisors if d == ho or (d * wo) % 128 == 0]
    preferred = [d for d in aligned if ho // d >= min_tiles] or aligned
    for d in preferred:
        if total_bytes_fn(d) <= budget:
            return d
    for d in aligned:                       # relax the min_tiles preference
        if total_bytes_fn(d) <= budget:
            return d
    return min(aligned, key=total_bytes_fn)  # smallest footprint; may still exceed


def _downsampler_kernel(x_ref, w00_ref, w01_ref, w10_ref, w11_ref,
                        scale_c_ref, shift_c_ref, scale_p_ref, shift_p_ref,
                        out_ref, *, th, wo, cin, cc):
    """One (batch, row-tile) grid step.

    x_ref     : (1, th+1, wo+1, 4*cin)  s2d planes incl. one halo plane-row
    wXY_ref   : (4*cin, cc)             per-plane-window conv weights (zero rows
                                        for the taps that fall outside the 3x3)
    scale_c/p : (1, cc) / (1, cin)      folded BN scale (conv / pool slab)
    shift_c/p : (1, cc) / (1, cin)      folded BN shift (conv bias folded in)
    out_ref   : (1, cout, th*wo)        channel-major output slab (lane-dense)

    Plane layout: xd[i, j, (2r+c)*cin + ch] == xpad[ch, 2i+r, 2j+c].
    """
    m = th * wo
    xd = x_ref[0]                                         # (th+1, wp, 4*cin)

    # 2x2 windows over the deinterleaved planes -- contiguous slices only.
    p00 = xd[0:th,     0:wo,     :].reshape(m, 4 * cin)
    p01 = xd[0:th,     1:wo + 1, :].reshape(m, 4 * cin)
    p10 = xd[1:th + 1, 0:wo,     :].reshape(m, 4 * cin)
    p11 = xd[1:th + 1, 1:wo + 1, :].reshape(m, 4 * cin)

    # ---- 3x3/s2 conv: 4 accumulating MXU matmuls (no lane-dim concat) ----
    conv = jnp.dot(p00, w00_ref[...], preferred_element_type=jnp.float32)
    conv = conv + jnp.dot(p01, w01_ref[...], preferred_element_type=jnp.float32)
    conv = conv + jnp.dot(p10, w10_ref[...], preferred_element_type=jnp.float32)
    conv = conv + jnp.dot(p11, w11_ref[...], preferred_element_type=jnp.float32)

    # ---- 2x2/s2 max-pool: elementwise max of 4 unpadded pixels (VPU) ----
    q00 = p00[:, 3 * cin:4 * cin]      # original (2i,   2j)
    q01 = p01[:, 2 * cin:3 * cin]      # original (2i,   2j+1)
    q10 = p10[:, 1 * cin:2 * cin]      # original (2i+1, 2j)
    q11 = p11[:, 0 * cin:1 * cin]      # original (2i+1, 2j+1)
    pool = jnp.maximum(jnp.maximum(q00, q01),
                       jnp.maximum(q10, q11)).astype(jnp.float32)

    # ---- folded BN affine + ReLU per slab; two sublane-range channel-major stores
    #      (no lane-dim conv/pool concat, output already lane-dense) ----
    conv_y = jnp.maximum(conv * scale_c_ref[...] + shift_c_ref[...], 0.0)
    pool_y = jnp.maximum(pool * scale_p_ref[...] + shift_p_ref[...], 0.0)
    out_ref[:, 0:cc, :] = jnp.transpose(conv_y)[None].astype(out_ref.dtype)
    out_ref[:, cc:cc + cin, :] = jnp.transpose(pool_y)[None].astype(out_ref.dtype)


@functools.partial(jax.jit, static_argnames=("eps", "row_tile", "io_dtype"))
def downsampler_block(x_nchw, w_oihw, bias, gamma, beta, run_mean, run_var,
                      eps=1e-3, row_tile=None, io_dtype=None):
    """DownsamplerBlock forward. x_nchw: (B, Cin, H, W) -> (B, Cout, H//2, W//2)."""
    b, cin, h, w = x_nchw.shape
    cc = w_oihw.shape[0]                  # noutput - ninput
    cout = cc + cin                       # noutput
    if h % 2 or w % 2:
        raise NotImplementedError("even H/W only (ERFNet uses even sizes)")
    ho, wo = h // 2, w // 2
    hp, wp = ho + 1, wo + 1
    out_dtype = x_nchw.dtype
    io_dt = jnp.dtype(io_dtype) if io_dtype is not None else jnp.dtype(out_dtype)

    # ---- padding-aware footprint model (used for tile selection and vmem limit) ----
    def footprint(th):
        m = th * wo
        in_blk = _padded_bytes((th + 1, wp, 4 * cin), io_dt)
        out_blk = _padded_bytes((1, cout, m), out_dtype)
        w_b = (4 * _padded_bytes((4 * cin, cc), io_dt)
               + 2 * _padded_bytes((1, cc), jnp.float32)
               + 2 * _padded_bytes((1, cin), jnp.float32))
        interm = (_padded_bytes((th + 1, wp, 4 * cin), io_dt)        # loaded block
                  + 4 * _padded_bytes((m, 4 * cin), io_dt)           # p00..p11
                  + 2 * _padded_bytes((m, cc), jnp.float32)          # conv acc + epilogue
                  + 2 * _padded_bytes((m, cin), jnp.float32)         # pool + epilogue
                  + _padded_bytes((cc, m), jnp.float32)              # transposed conv
                  + _padded_bytes((cin, m), jnp.float32))            # transposed pool
        return in_blk, out_blk, w_b, interm

    def total_bytes(th):
        in_blk, out_blk, w_b, interm = footprint(th)
        # double-buffered in/out blocks + (small) weight buffers + intermediates + slack
        return 2 * (in_blk + out_blk) + 2 * w_b + interm + (1 << 20)

    # ---- row tiling: prefer >=2 total grid steps when B==1 (megacore) ----
    min_tiles = 2 if b < 2 else 1
    if row_tile is None:
        row_tile = _pick_row_tile(ho, wo, total_bytes, TILE_BUDGET_BYTES, min_tiles)
    assert ho % row_tile == 0
    assert row_tile == ho or (row_tile * wo) % 128 == 0, (
        "row_tile*wo must be a multiple of 128 (or cover all rows)")
    nt = ho // row_tile

    vmem_limit = int(min(VMEM_CAP_BYTES, max(16 << 20, total_bytes(row_tile))))

    # ---- host layout pass: pad + space-to-depth deinterleave, then per-tile halo ----
    # xd[b, i, j, (2r+c)*cin + ch] = xpad[b, ch, 2i+r, 2j+c]
    xpad = jnp.pad(x_nchw, ((0, 0), (0, 0), (1, 1), (1, 1)))
    xd = xpad.reshape(b, cin, hp, 2, wp, 2)
    xd = jnp.transpose(xd, (0, 2, 4, 3, 5, 1)).reshape(b, hp, wp, 4 * cin)
    xd = xd.astype(io_dt)
    xmain = xd[:, :ho].reshape(b, nt, row_tile, wp, 4 * cin)
    xhalo = xd[:, row_tile::row_tile][:, :, None]          # (b, nt, 1, wp, 4*cin)
    xtiled = jnp.concatenate([xmain, xhalo], axis=2)       # (b, nt, rt+1, wp, 4*cin)
    xtiled = xtiled.reshape(b * nt, row_tile + 1, wp, 4 * cin)

    # ---- per-plane-window conv weights (4 blocks of (4*cin, cc)) ----
    w_hwio = jnp.transpose(w_oihw, (2, 3, 1, 0)).astype(jnp.float32)   # (3,3,cin,cc)

    def plane_weights(dy, dx):
        blocks = []
        for r in (0, 1):
            for c in (0, 1):
                ky, kx = 2 * dy + r, 2 * dx + c
                blocks.append(w_hwio[ky, kx] if (ky < 3 and kx < 3)
                              else jnp.zeros((cin, cc), jnp.float32))
        return jnp.concatenate(blocks, axis=0).astype(io_dt)           # (4*cin, cc)

    w00 = plane_weights(0, 0)
    w01 = plane_weights(0, 1)
    w10 = plane_weights(1, 0)
    w11 = plane_weights(1, 1)

    # ---- fold BN (+ conv bias) into one affine per slab:  y = scale*x + shift ----
    scale = (gamma / jnp.sqrt(run_var + eps)).astype(jnp.float32)
    shift = (beta - run_mean * scale).astype(jnp.float32)
    shift = shift.at[:cc].add(scale[:cc] * bias.astype(jnp.float32))   # conv bias
    scale_c = scale[:cc].reshape(1, cc)
    shift_c = shift[:cc].reshape(1, cc)
    scale_p = scale[cc:].reshape(1, cin)
    shift_p = shift[cc:].reshape(1, cin)

    kernel = functools.partial(_downsampler_kernel,
                               th=row_tile, wo=wo, cin=cin, cc=cc)

    out_flat = pl.pallas_call(
        kernel,
        out_shape=jax.ShapeDtypeStruct((b, cout, ho * wo), out_dtype),
        grid=(b, nt),
        in_specs=[
            # one row tile (with its halo plane-row already attached on the host)
            pl.BlockSpec((1, row_tile + 1, wp, 4 * cin),
                         lambda bi, ti: (bi * nt + ti, 0, 0, 0)),
            pl.BlockSpec((4 * cin, cc), lambda bi, ti: (0, 0)),
            pl.BlockSpec((4 * cin, cc), lambda bi, ti: (0, 0)),
            pl.BlockSpec((4 * cin, cc), lambda bi, ti: (0, 0)),
            pl.BlockSpec((4 * cin, cc), lambda bi, ti: (0, 0)),
            pl.BlockSpec((1, cc), lambda bi, ti: (0, 0)),
            pl.BlockSpec((1, cc), lambda bi, ti: (0, 0)),
            pl.BlockSpec((1, cin), lambda bi, ti: (0, 0)),
            pl.BlockSpec((1, cin), lambda bi, ti: (0, 0)),
        ],
        out_specs=pl.BlockSpec((1, cout, row_tile * wo),
                               lambda bi, ti: (bi, 0, ti)),
        compiler_params=pltpu.CompilerParams(
            dimension_semantics=("parallel", "parallel"),
            vmem_limit_bytes=vmem_limit),
    )(xtiled, w00, w01, w10, w11, scale_c, shift_c, scale_p, shift_p)

    # Output is already channel-major: just a free reshape back to NCHW.
    return out_flat.reshape(b, cout, ho, wo)


def _reference(x_nchw, w_oihw, bias, gamma, beta, run_mean, run_var, eps=1e-3):
    """Pure-JAX reference (XLA conv/reduce_window) for correctness check."""
    conv = jax.lax.conv_general_dilated(
        x_nchw, w_oihw, window_strides=(2, 2), padding=((1, 1), (1, 1)),
        dimension_numbers=("NCHW", "OIHW", "NCHW"))
    conv = conv + bias[None, :, None, None]
    pool = jax.lax.reduce_window(
        x_nchw, -jnp.inf, jax.lax.max,
        window_dimensions=(1, 1, 2, 2), window_strides=(1, 1, 2, 2),
        padding="VALID")
    cat = jnp.concatenate([conv, pool], axis=1)
    bn = (cat - run_mean[None, :, None, None]) / jnp.sqrt(
        run_var[None, :, None, None] + eps)
    bn = bn * gamma[None, :, None, None] + beta[None, :, None, None]
    return jnp.maximum(bn, 0.0)


if __name__ == "__main__":
    key = jax.random.PRNGKey(0)

    def make_params(k, nin, nout):
        cc = nout - nin
        kw, kb, kg, kbe, km, kv = jax.random.split(k, 6)
        wgt = jax.random.normal(kw, (cc, nin, 3, 3), dtype=jnp.float32) * 0.1
        bconv = jax.random.normal(kb, (cc,), dtype=jnp.float32) * 0.1
        gamma = 1.0 + 0.1 * jax.random.normal(kg, (nout,), dtype=jnp.float32)
        beta = 0.1 * jax.random.normal(kbe, (nout,), dtype=jnp.float32)
        mean = 0.1 * jax.random.normal(km, (nout,), dtype=jnp.float32)
        var = 1.0 + 0.1 * jnp.abs(jax.random.normal(kv, (nout,), dtype=jnp.float32))
        return wgt, bconv, gamma, beta, mean, var

    k1, k2, kx1, kx2 = jax.random.split(key, 4)

    # --- test 1: DownsamplerBlock(4 -> 16), f32 I/O, batch-parallel grid ---
    B, NIN, NOUT, H, W = 2, 4, 16, 16, 16
    params1 = make_params(k1, NIN, NOUT)
    x1 = jax.random.normal(kx1, (B, NIN, H, W), dtype=jnp.float32)
    out1 = jax.block_until_ready(downsampler_block(x1, *params1))
    ref1 = _reference(x1, *params1)
    assert out1.shape == (B, NOUT, H // 2, W // 2), out1.shape
    assert jnp.allclose(out1, ref1, atol=1e-4, rtol=1e-4), (
        float(jnp.max(jnp.abs(out1 - ref1))))

    # --- test 2: B=1 (auto row tiling picks >=2 tiles) + bf16 activation/weight I/O ---
    B2, NIN2, NOUT2, H2, W2 = 1, 8, 24, 64, 64
    params2 = make_params(k2, NIN2, NOUT2)
    x2 = jax.random.normal(kx2, (B2, NIN2, H2, W2), dtype=jnp.float32)
    out2 = jax.block_until_ready(
        downsampler_block(x2, *params2, io_dtype=jnp.bfloat16))
    ref2 = _reference(x2, *params2)
    assert out2.shape == (B2, NOUT2, H2 // 2, W2 // 2), out2.shape
    assert jnp.allclose(out2, ref2, atol=1e-1, rtol=1e-1), (
        float(jnp.max(jnp.abs(out2 - ref2))))

    print("KERNEL_OK")
</pallas_src>

<mosaic_0001>
module attributes {stable_mosaic.version = 11 : i64} {
  func.func @_downsampler_kernel(%arg0: i32, %arg1: i32, %arg2: memref<1x9x9x16xf32, #tpu.memory_space<vmem>>, %arg3: memref<16x12xf32, #tpu.memory_space<vmem>>, %arg4: memref<16x12xf32, #tpu.memory_space<vmem>>, %arg5: memref<16x12xf32, #tpu.memory_space<vmem>>, %arg6: memref<16x12xf32, #tpu.memory_space<vmem>>, %arg7: memref<1x12xf32, #tpu.memory_space<vmem>>, %arg8: memref<1x12xf32, #tpu.memory_space<vmem>>, %arg9: memref<1x4xf32, #tpu.memory_space<vmem>>, %arg10: memref<1x4xf32, #tpu.memory_space<vmem>>, %arg11: memref<1x16x64xf32, #tpu.memory_space<vmem>>) attributes {dimension_semantics = [#tpu.dimension_semantics<parallel>, #tpu.dimension_semantics<parallel>], iteration_bounds = array<i64: 2, 1>, scalar_prefetch = 0 : i64, scratch_operands = 0 : i64, tpu.core_type = #tpu.core_type<tc>, window_params = [{transform_indices = @transform_0, window_bounds = array<i64: 1, 9, 9, 16>}, {pipeline_mode = #tpu.pipeline_mode<synchronous>, transform_indices = @transform_1, window_bounds = array<i64: 16, 12>}, {pipeline_mode = #tpu.pipeline_mode<synchronous>, transform_indices = @transform_2, window_bounds = array<i64: 16, 12>}, {pipeline_mode = #tpu.pipeline_mode<synchronous>, transform_indices = @transform_3, window_bounds = array<i64: 16, 12>}, {pipeline_mode = #tpu.pipeline_mode<synchronous>, transform_indices = @transform_4, window_bounds = array<i64: 16, 12>}, {pipeline_mode = #tpu.pipeline_mode<synchronous>, transform_indices = @transform_5, window_bounds = array<i64: 1, 12>}, {pipeline_mode = #tpu.pipeline_mode<synchronous>, transform_indices = @transform_6, window_bounds = array<i64: 1, 12>}, {pipeline_mode = #tpu.pipeline_mode<synchronous>, transform_indices = @transform_7, window_bounds = array<i64: 1, 4>}, {pipeline_mode = #tpu.pipeline_mode<synchronous>, transform_indices = @transform_8, window_bounds = array<i64: 1, 4>}, {transform_indices = @transform_9, window_bounds = array<i64: 1, 16, 64>}]} {
    %c0 = arith.constant 0 : index
    %c0_0 = arith.constant 0 : index
    %c0_1 = arith.constant 0 : index
    %c0_2 = arith.constant 0 : index
    %0 = vector.load %arg2[%c0, %c0_0, %c0_1, %c0_2] : memref<1x9x9x16xf32, #tpu.memory_space<vmem>>, vector<1x9x9x16xf32>
    %1 = vector.shape_cast %0 : vector<1x9x9x16xf32> to vector<9x9x16xf32>
    %2 = vector.extract_strided_slice %1 {offsets = [0, 0, 0], sizes = [8, 8, 16], strides = [1, 1, 1]} : vector<9x9x16xf32> to vector<8x8x16xf32>
    %3 = vector.shape_cast %2 : vector<8x8x16xf32> to vector<64x16xf32>
    %4 = vector.extract_strided_slice %1 {offsets = [0, 1, 0], sizes = [8, 8, 16], strides = [1, 1, 1]} : vector<9x9x16xf32> to vector<8x8x16xf32>
    %5 = vector.shape_cast %4 : vector<8x8x16xf32> to vector<64x16xf32>
    %6 = vector.extract_strided_slice %1 {offsets = [1, 0, 0], sizes = [8, 8, 16], strides = [1, 1, 1]} : vector<9x9x16xf32> to vector<8x8x16xf32>
    %7 = vector.shape_cast %6 : vector<8x8x16xf32> to vector<64x16xf32>
    %8 = vector.extract_strided_slice %1 {offsets = [1, 1, 0], sizes = [8, 8, 16], strides = [1, 1, 1]} : vector<9x9x16xf32> to vector<8x8x16xf32>
    %9 = vector.shape_cast %8 : vector<8x8x16xf32> to vector<64x16xf32>
    %c0_3 = arith.constant 0 : index
    %c0_4 = arith.constant 0 : index
    %10 = vector.load %arg3[%c0_3, %c0_4] : memref<16x12xf32, #tpu.memory_space<vmem>>, vector<16x12xf32>
    %cst = arith.constant dense<0.000000e+00> : vector<64x12xf32>
    %11 = tpu.matmul %3, %10, %cst {dimension_numbers = #tpu.dot_dimension_numbers<[1], [0], [0], [1], [0, 0, 1, 1], [], []>} : vector<64x16xf32>, vector<16x12xf32>, vector<64x12xf32> -> vector<64x12xf32>
    %c0_5 = arith.constant 0 : index
    %c0_6 = arith.constant 0 : index
    %12 = vector.load %arg4[%c0_5, %c0_6] : memref<16x12xf32, #tpu.memory_space<vmem>>, vector<16x12xf32>
    %cst_7 = arith.constant dense<0.000000e+00> : vector<64x12xf32>
    %13 = tpu.matmul %5, %12, %cst_7 {dimension_numbers = #tpu.dot_dimension_numbers<[1], [0], [0], [1], [0, 0, 1, 1], [], []>} : vector<64x16xf32>, vector<16x12xf32>, vector<64x12xf32> -> vector<64x12xf32>
    %14 = arith.addf %11, %13 : vector<64x12xf32>
    %c0_8 = arith.constant 0 : index
    %c0_9 = arith.constant 0 : index
    %15 = vector.load %arg5[%c0_8, %c0_9] : memref<16x12xf32, #tpu.memory_space<vmem>>, vector<16x12xf32>
    %cst_10 = arith.constant dense<0.000000e+00> : vector<64x12xf32>
    %16 = tpu.matmul %7, %15, %cst_10 {dimension_numbers = #tpu.dot_dimension_numbers<[1], [0], [0], [1], [0, 0, 1, 1], [], []>} : vector<64x16xf32>, vector<16x12xf32>, vector<64x12xf32> -> vector<64x12xf32>
    %17 = arith.addf %14, %16 : vector<64x12xf32>
    %c0_11 = arith.constant 0 : index
    %c0_12 = arith.constant 0 : index
    %18 = vector.load %arg6[%c0_11, %c0_12] : memref<16x12xf32, #tpu.memory_space<vmem>>, vector<16x12xf32>
    %cst_13 = arith.constant dense<0.000000e+00> : vector<64x12xf32>
    %19 = tpu.matmul %9, %18, %cst_13 {dimension_numbers = #tpu.dot_dimension_numbers<[1], [0], [0], [1], [0, 0, 1, 1], [], []>} : vector<64x16xf32>, vector<16x12xf32>, vector<64x12xf32> -> vector<64x12xf32>
    %20 = arith.addf %17, %19 : vector<64x12xf32>
    %21 = vector.extract_strided_slice %3 {offsets = [0, 12], sizes = [64, 4], strides = [1, 1]} : vector<64x16xf32> to vector<64x4xf32>
    %22 = vector.extract_strided_slice %5 {offsets = [0, 8], sizes = [64, 4], strides = [1, 1]} : vector<64x16xf32> to vector<64x4xf32>
    %23 = vector.extract_strided_slice %7 {offsets = [0, 4], sizes = [64, 4], strides = [1, 1]} : vector<64x16xf32> to vector<64x4xf32>
    %24 = vector.extract_strided_slice %9 {offsets = [0, 0], sizes = [64, 4], strides = [1, 1]} : vector<64x16xf32> to vector<64x4xf32>
    %25 = arith.maximumf %21, %22 : vector<64x4xf32>
    %26 = arith.maximumf %23, %24 : vector<64x4xf32>
    %27 = arith.maximumf %25, %26 : vector<64x4xf32>
    %c0_14 = arith.constant 0 : index
    %c0_15 = arith.constant 0 : index
    %28 = vector.load %arg7[%c0_14, %c0_15] : memref<1x12xf32, #tpu.memory_space<vmem>>, vector<1x12xf32>
    %29 = vector.broadcast %28 : vector<1x12xf32> to vector<64x12xf32>
    %30 = arith.mulf %20, %29 : vector<64x12xf32>
    %c0_16 = arith.constant 0 : index
    %c0_17 = arith.constant 0 : index
    %31 = vector.load %arg8[%c0_16, %c0_17] : memref<1x12xf32, #tpu.memory_space<vmem>>, vector<1x12xf32>
    %32 = vector.broadcast %31 : vector<1x12xf32> to vector<64x12xf32>
    %33 = arith.addf %30, %32 : vector<64x12xf32>
    %cst_18 = arith.constant 0.000000e+00 : f32
    %34 = vector.broadcast %cst_18 : f32 to vector<64x12xf32>
    %35 = arith.maximumf %33, %34 : vector<64x12xf32>
    %c0_19 = arith.constant 0 : index
    %c0_20 = arith.constant 0 : index
    %36 = vector.load %arg9[%c0_19, %c0_20] : memref<1x4xf32, #tpu.memory_space<vmem>>, vector<1x4xf32>
    %37 = vector.broadcast %36 : vector<1x4xf32> to vector<64x4xf32>
    %38 = arith.mulf %27, %37 : vector<64x4xf32>
    %c0_21 = arith.constant 0 : index
    %c0_22 = arith.constant 0 : index
    %39 = vector.load %arg10[%c0_21, %c0_22] : memref<1x4xf32, #tpu.memory_space<vmem>>, vector<1x4xf32>
    %40 = vector.broadcast %39 : vector<1x4xf32> to vector<64x4xf32>
    %41 = arith.addf %38, %40 : vector<64x4xf32>
    %cst_23 = arith.constant 0.000000e+00 : f32
    %42 = vector.broadcast %cst_23 : f32 to vector<64x4xf32>
    %43 = arith.maximumf %41, %42 : vector<64x4xf32>
    %44 = tpu.transpose %35, [1, 0] : vector<64x12xf32> -> vector<12x64xf32>
    %45 = vector.shape_cast %44 : vector<12x64xf32> to vector<1x12x64xf32>
    %c0_24 = arith.constant 0 : index
    %c0_25 = arith.constant 0 : index
    %c0_26 = arith.constant 0 : index
    %46 = vector.load %arg11[%c0_24, %c0_25, %c0_26] : memref<1x16x64xf32, #tpu.memory_space<vmem>>, vector<1x12x64xf32>
    tpu.vector_store %arg11[%c0_24, %c0_25, %c0_26], %45 {strides = array<i32>} : memref<1x16x64xf32, #tpu.memory_space<vmem>>, vector<1x12x64xf32>,
    %47 = tpu.transpose %43, [1, 0] : vector<64x4xf32> -> vector<4x64xf32>
    %48 = vector.shape_cast %47 : vector<4x64xf32> to vector<1x4x64xf32>
    %c0_27 = arith.constant 0 : index
    %c12 = arith.constant 12 : index
    %c0_28 = arith.constant 0 : index
    %49 = vector.load %arg11[%c0_27, %c12, %c0_28] : memref<1x16x64xf32, #tpu.memory_space<vmem>>, vector<1x4x64xf32>
    tpu.vector_store %arg11[%c0_27, %c12, %c0_28], %48 {strides = array<i32>} : memref<1x16x64xf32, #tpu.memory_space<vmem>>, vector<1x4x64xf32>,
    return
  }
  func.func @transform_0(%arg0: i32, %arg1: i32) -> (i32, i32, i32, i32) {
    %c1_i32 = arith.constant 1 : i32
    %0 = arith.muli %arg0, %c1_i32 : i32
    %1 = arith.addi %0, %arg1 : i32
    %c0_i32 = arith.constant 0 : i32
    %c0_i32_0 = arith.constant 0 : i32
    %c0_i32_1 = arith.constant 0 : i32
    %c0_i32_2 = arith.constant 0 : i32
    return %1, %c0_i32, %c0_i32_0, %c0_i32_1 : i32, i32, i32, i32
  }
  func.func @transform_1(%arg0: i32, %arg1: i32) -> (i32, i32) {
    %c0_i32 = arith.constant 0 : i32
    %c0_i32_0 = arith.constant 0 : i32
    %c0_i32_1 = arith.constant 0 : i32
    return %c0_i32, %c0_i32_0 : i32, i32
  }
  func.func @transform_2(%arg0: i32, %arg1: i32) -> (i32, i32) {
    %c0_i32 = arith.constant 0 : i32
    %c0_i32_0 = arith.constant 0 : i32
    %c0_i32_1 = arith.constant 0 : i32
    return %c0_i32, %c0_i32_0 : i32, i32
  }
  func.func @transform_3(%arg0: i32, %arg1: i32) -> (i32, i32) {
    %c0_i32 = arith.constant 0 : i32
    %c0_i32_0 = arith.constant 0 : i32
    %c0_i32_1 = arith.constant 0 : i32
    return %c0_i32, %c0_i32_0 : i32, i32
  }
  func.func @transform_4(%arg0: i32, %arg1: i32) -> (i32, i32) {
    %c0_i32 = arith.constant 0 : i32
    %c0_i32_0 = arith.constant 0 : i32
    %c0_i32_1 = arith.constant 0 : i32
    return %c0_i32, %c0_i32_0 : i32, i32
  }
  func.func @transform_5(%arg0: i32, %arg1: i32) -> (i32, i32) {
    %c0_i32 = arith.constant 0 : i32
    %c0_i32_0 = arith.constant 0 : i32
    %c0_i32_1 = arith.constant 0 : i32
    return %c0_i32, %c0_i32_0 : i32, i32
  }
  func.func @transform_6(%arg0: i32, %arg1: i32) -> (i32, i32) {
    %c0_i32 = arith.constant 0 : i32
    %c0_i32_0 = arith.constant 0 : i32
    %c0_i32_1 = arith.constant 0 : i32
    return %c0_i32, %c0_i32_0 : i32, i32
  }
  func.func @transform_7(%arg0: i32, %arg1: i32) -> (i32, i32) {
    %c0_i32 = arith.constant 0 : i32
    %c0_i32_0 = arith.constant 0 : i32
    %c0_i32_1 = arith.constant 0 : i32
    return %c0_i32, %c0_i32_0 : i32, i32
  }
  func.func @transform_8(%arg0: i32, %arg1: i32) -> (i32, i32) {
    %c0_i32 = arith.constant 0 : i32
    %c0_i32_0 = arith.constant 0 : i32
    %c0_i32_1 = arith.constant 0 : i32
    return %c0_i32, %c0_i32_0 : i32, i32
  }
  func.func @transform_9(%arg0: i32, %arg1: i32) -> (i32, i32, i32) {
    %c0_i32 = arith.constant 0 : i32
    %c0_i32_0 = arith.constant 0 : i32
    return %arg0, %c0_i32, %arg1 : i32, i32, i32
  }
}

</mosaic_0001>

<bundles_post_ra>
// kernel: downsampler_block.1
= control target key start
LH: loop header
LB: loop body
LE: loop exit
PB: predicated region body
PF: predicated region fallthrough
CT: control target
= control target key end

     0   :  { %s1498_s30 = smov 0   ;;  %s1500_s10 = smov 0   ;;  %s1720_s0 = inlined_call_operand.vmem [shape: f32[2,9,9,16], index: 0, kind: input, shape index: {}]   ;;  %s1721_s1 = inlined_call_operand.vmem [shape: f32[16,12], index: 1, kind: input, shape index: {}]   ;;  %s1722_s2 = inlined_call_operand.vmem [shape: f32[16,12], index: 2, kind: input, shape index: {}]   ;;  %s1723_s3 = inlined_call_operand.vmem [shape: f32[16,12], index: 3, kind: input, shape index: {}]   ;;  %s1724_s4 = inlined_call_operand.vmem [shape: f32[16,12], index: 4, kind: input, shape index: {}]   ;;  %s1725_s5 = inlined_call_operand.vmem [shape: f32[1,12], index: 5, kind: input, shape index: {}]   ;;  %s1726_s6 = inlined_call_operand.vmem [shape: f32[1,12], index: 6, kind: input, shape index: {}]   ;;  %s1727_s7 = inlined_call_operand.vmem [shape: f32[1,4], index: 7, kind: input, shape index: {}]   ;;  %s1728_s8 = inlined_call_operand.vmem [shape: f32[1,4], index: 8, kind: input, shape index: {}]   ;;  %s1729_s9 = inlined_call_operand.vmem [shape: f32[2,16,64], index: 9, kind: output, shape index: {}]  }
   0x1   :  { %s1502_s11 = smov 0  }
   0x2 LB: > { %s31_s12 = sadd.s32 1, %s1438_s10  ;;  %p1243_p0 = scmp.ge.s32.totalorder %s1442_s11, 1  ;;  %s1442_s11 = sphi %s1502_s11, %s19_s11   ;;  %s1438_s10 = sphi %s1500_s10, %s1731_s10   ;;  %s1434_s30 = sphi %s1498_s30, %s1730_s30  }
   0x3   : > { %p33_p1 = scmp.ge.s32.totalorder %s31_s12, 2  ;;  %p305_p2 = scmp.lt.s32.totalorder %s1442_s11, 3 }
   0x5   : > { %s1733_s12 = smov (%p33_p1, %s31_s12), 0  ;;  %p306_p3 = pnand %p1243_p0, %p305_p2 }
   0x6   : > { %p346_p4 = scmp.lt.s32.totalorder (!%p306_p3), %s1434_s30, 1  ;;  %s1444_s29 = smov (!%p306_p3), 4  }
   0x7   : > { %309 = sbr.rel (%p306_p3) target bundleno = 501 (0x1f5), region = 56  ;;  %s1445_s19 = smov (!%p306_p3), 12  }
   0x8   : > { %s1446_s20 = smov (!%p306_p3), 8   ;;  %s1447_s23 = smov (!%p306_p3), 116  }
   0xc   : > { %v427_v0 = vld [vmem:[%s1722_s2 + $0x8] sm:$0xff]  ;;  %v426_v1 = vld [vmem:[%s1722_s2] sm:$0xff]  ;;  %s1735_s30 = smov (!%p346_p4, %s1434_s30), 1  ;;  %vm394_vm0 = vcmask 1046528   ;;  %vm428_vm1 = vcmask 130048   ;;  %vm1093_vm2 = vcmask 523264  }
   0xd   : > { %v425_v2 = vld [vmem:[%s1721_s1 + $0x8] sm:$0xff]  ;;  %1326 = vmatprep.subr.mxu0 %v427_v0  ;;  %v424_v3 = vld [vmem:[%s1721_s1] sm:$0xff]  ;;  %s1390_s25 = smul.u32 144, %s1735_s30  ;;  %vm1095_vm3 = vcmask 519168  }
   0xe   : > { %1342 = vmatprep.subr.mxu1 %v425_v2  ;;  %1327 = vmatpush3.msra.mxu0 %v427_v0  ;;  %v1533_v4 = vld [vmem:[%s1723_s3 + $0x8] sm:$0xff]  ;;  %v788_v39 = vld [vmem:[%s1724_s4] sm:$0xff] }
   0xf   : > { %1343 = vmatpush3.msra.mxu1 %v425_v2  ;;  %v789_v5 = vld [vmem:[%s1724_s4 + $0x8] sm:$0xff]  ;;  %1328 = vmatprep.subr.mxu0 %v426_v1  ;;  %s1543_s28 = scalar_lea.vmem %s1720_s0, %s1390_s25  ;;  %v671_v52 = vld [vmem:[%s1723_s3] sm:$0xff] }
  0x10   : > { %1344 = vmatprep.subr.mxu1 %v424_v3  ;;  %1329 = vmatpush3.msra.mxu0 %v426_v1  ;;  %v1546_v6 = vld [vmem:[%s1543_s28 + $0x10] sm:$0xff]  ;;  %v363_v7 = vld [vmem:[%s1543_s28 + $0x18] sm:$0x1]  ;;  %v1550_v8 = vld [vmem:[%s1543_s28 + $0x20] sm:$0xff] }
  0x11   : > { %1345 = vmatpush3.msra.mxu1 %v424_v3  ;;  %1358 = vmatprep.subr.mxu0 %v1533_v4  ;;  %v398_v9 = vrot.slane %v1546_v6, 1  ;;  %v399_v10 = vrot.slane %v363_v7, 1  ;;  %v365_v11 = vld [vmem:[%s1543_s28 + $0x28] sm:$0x1]  ;;  %v401_v12 = vrot.slane %v1550_v8, 1  ;;  %v1556_v13 = vld [vmem:[%s1543_s28 + $0x30] sm:$0xff] }
  0x12   : > { %1374 = vmatprep.subr.mxu1 %v789_v5  ;;  %v402_v14 = vrot.slane %v365_v11, 1  ;;  %v367_v15 = vld [vmem:[%s1543_s28 + $0x38] sm:$0x1]  ;;  %v404_v16 = vrot.slane %v1556_v13, 1  ;;  %v1561_v17 = vld [vmem:[%s1543_s28 + $0x50] sm:$0xff]  ;;  %v1564_v18 = vld [vmem:[%s1543_s28 + $0x40] sm:$0xff] }
  0x13   : > { %v1567_v19 = vsel %vm394_vm0, %v398_v9, %v399_v10  ;;  %v405_v20 = vrot.slane %v367_v15, 1  ;;  %v371_v21 = vld [vmem:[%s1543_s28 + $0x58] sm:$0x1]  ;;  %v369_v22 = vld [vmem:[%s1543_s28 + $0x48] sm:$0x1]  ;;  %v407_v23 = vrot.slane %v1564_v18, 1 }
  0x14   : > { %907 = vrot.lane.b32.xlu0 %v1567_v19, %s1444_s29  ;;  %v408_v24 = vrot.slane %v369_v22, 1  ;;  %v1575_v25 = vsel %vm394_vm0, %v401_v12, %v402_v14  ;;  %v410_v27 = vrot.slane %v1561_v17, 1  ;;  %v411_v28 = vrot.slane %v371_v21, 1  ;;  %v1582_v29 = vld [vmem:[%s1543_s28 + $0x60] sm:$0xff]  ;;  %v373_v30 = vld [vmem:[%s1543_s28 + $0x68] sm:$0x1] }
  0x15   : > { %v1578_v26 = vsel %vm394_vm0, %v404_v16, %v405_v20  ;;  %v1588_v31 = vld [vmem:[%s1543_s28 + $0x70] sm:$0xff]  ;;  %v375_v32 = vld [vmem:[%s1543_s28 + $0x78] sm:$0x1]  ;;  %v1592_v33 = vld [vmem:[%s1543_s28] sm:$0xff]  ;;  %v413_v35 = vrot.slane %v1582_v29, 1  ;;  %v414_v36 = vrot.slane %v373_v30, 1 }
  0x16   : > { %911 = vrot.lane.b32.xlu1 %v1578_v26, %s1444_s29  ;;  %v409_v34 = vsel %vm394_vm0, %v407_v23, %v408_v24  ;;  %v361_v37 = vld [vmem:[%s1543_s28 + $0x8] sm:$0x1]  ;;  %v395_v38 = vrot.slane %v1592_v33, 1  ;;  %1346 = vmatprep.mubr.msk.f32.mxu1 %vm428_vm1, %v1592_v33  ;;  %v1606_v40 = vld [vmem:[%s1543_s28 + $0x80] sm:$0xff]  ;;  %v412_v43 = vsel %vm394_vm0, %v410_v27, %v411_v28  ;;  %v416_v44 = vrot.slane %v1588_v31, 1 }
  0x17   : > { %v377_v41 = vld [vmem:[%s1543_s28 + $0x88] sm:$0x1]  ;;  %v396_v42 = vrot.slane %v361_v37, 1  ;;  %1347 = vmatmul.mubr.msk.f32.vlgmr.msra.gmra.mxu1 %vm428_vm1, %v1546_v6  ;;  %v417_v45 = vrot.slane %v375_v32, 1  ;;  %v415_v47 = vsel %vm394_vm0, %v413_v35, %v414_v36  ;;  %v421_v48 = vrot.slane %v1606_v40, 1  ;;  %s1285_s28 = sshll.u32 %s1735_s30, 4 }
  0x18   : > { %909 = vrot.lane.b32.xlu0 %v1575_v25, %s1444_s29  ;;  %1349 = vmatprep.mubr.msk.f32.mxu1 %vm428_vm1, %v1550_v8  ;;  %v422_v49 = vrot.slane %v377_v41, 1  ;;  %v1281_v53 = vld [vmem:[%s1727_s7] ss:$0 sm:$0xff]  ;;  %s359_s14 = scalar_lea.vmem %s1729_s9, %s1285_s28 }
  0x19   : > { %1375 = vmatpush3.msra.mxu1 %v789_v5  ;;  %v397_v46 = vsel %vm394_vm0, %v395_v38, %v396_v42  ;;  %v418_v50 = vsel %vm394_vm0, %v416_v44, %v417_v45  ;;  %v1282_v58 = vld [vmem:[%s1728_s8] ss:$0 sm:$0xff] }
  0x1a   : > { %913 = vrot.lane.b32.xlu1 %v409_v34, %s1444_s29  ;;  %1376 = vmatprep.subr.mxu1 %v788_v39  ;;  %v423_v51 = vsel %vm394_vm0, %v421_v48, %v422_v49 }
  0x1b   : > { %1330 = vmatprep.mubr.msk.f32.mxu0 %vm428_vm1, %v397_v46  ;;  %1377 = vmatpush3.msra.mxu1 %v788_v39 }
  0x1c   : > { %915 = vrot.lane.b32.xlu0 %v412_v43, %s1444_s29  ;;  %1331 = vmatmul.mubr.msk.f32.vlgmr.msra.gmra.mxu0 %vm428_vm1, %v1567_v19 }
  0x1d   : > { %1333 = vmatprep.mubr.msk.f32.mxu0 %vm428_vm1, %v1575_v25  ;;  %1350 = vmatmul.mubr.msk.f32.gmra.mxu1 %vm428_vm1, %v1556_v13 }
  0x1e   : > { %917 = vrot.lane.b32.xlu1 %v415_v47, %s1444_s29  ;;  %1352 = vmatprep.mubr.msk.f32.mxu1 %vm428_vm1, %v1564_v18 }
  0x1f   : > { %1359 = vmatpush3.msra.mxu0 %v1533_v4 }
  0x20   : > { %919 = vrot.lane.b32.xlu0 %v418_v50, %s1444_s29  ;;  %1334 = vmatmul.mubr.msk.f32.gmra.mxu0 %vm428_vm1, %v1578_v26 }
  0x21   : > { %1336 = vmatprep.mubr.msk.f32.mxu0 %vm428_vm1, %v409_v34  ;;  %1353 = vmatmul.mubr.msk.f32.gmra.mxu1 %vm428_vm1, %v1561_v17 }
  0x22   : > { %937 = vrot.lane.b32.xlu1 %v423_v51, %s1444_s29  ;;  %1355 = vmatprep.mubr.msk.f32.mxu1 %vm428_vm1, %v1582_v29 }
  0x23   : > { %1360 = vmatprep.subr.mxu0 %v671_v52 }
  0x24   : > { %1337 = vmatmul.mubr.msk.f32.gmra.mxu0 %vm428_vm1, %v412_v43  ;;  %905 = vrot.lane.b32.xlu0 %v397_v46, %s1444_s29 }
  0x25   : > { %1339 = vmatprep.mubr.msk.f32.mxu0 %vm428_vm1, %v415_v47  ;;  %1356 = vmatmul.mubr.msk.f32.gmra.mxu1 %vm428_vm1, %v1588_v31 }
  0x26   : > { %1025 = vrot.lane.b32.xlu1 %v1281_v53, %s1445_s19  ;;  %1361 = vmatpush3.msra.mxu0 %v671_v52 }
  0x27   : > { %1378 = vmatprep.mubr.msk.f32.mxu1 %vm428_vm1, %v1567_v19 }
  0x28   : > { %1340 = vmatmul.mubr.msk.f32.gmra.mxu0 %vm428_vm1, %v418_v50 }
  0x29   : > { %1362 = vmatprep.mubr.msk.f32.mxu0 %vm428_vm1, %v1546_v6  ;;  %1379 = vmatmul.mubr.msk.f32.vlgmr.msra.gmra.mxu1 %vm428_vm1, %v1575_v25 }
  0x2a   : > { %1381 = vmatprep.mubr.msk.f32.mxu1 %vm428_vm1, %v1578_v26 }
  0x2c   : > { %1363 = vmatmul.mubr.msk.f32.vlgmr.msra.gmra.mxu0 %vm428_vm1, %v1550_v8 }
  0x2d   : > { %1365 = vmatprep.mubr.msk.f32.mxu0 %vm428_vm1, %v1556_v13  ;;  %1382 = vmatmul.mubr.msk.f32.gmra.mxu1 %vm428_vm1, %v409_v34 }
  0x2e   : > { %1384 = vmatprep.mubr.msk.f32.mxu1 %vm428_vm1, %v412_v43 }
  0x30   : > { %1366 = vmatmul.mubr.msk.f32.gmra.mxu0 %vm428_vm1, %v1564_v18 }
  0x31   : > { %1368 = vmatprep.mubr.msk.f32.mxu0 %vm428_vm1, %v1561_v17  ;;  %1385 = vmatmul.mubr.msk.f32.gmra.mxu1 %vm428_vm1, %v415_v47 }
  0x32   : > { %1387 = vmatprep.mubr.msk.f32.mxu1 %vm428_vm1, %v418_v50 }
  0x34   : > { %1369 = vmatmul.mubr.msk.f32.gmra.mxu0 %vm428_vm1, %v1582_v29 }
  0x35   : > { %1371 = vmatprep.mubr.msk.f32.mxu0 %vm428_vm1, %v1588_v31  ;;  %1388 = vmatmul.mubr.msk.f32.gmra.mxu1 %vm428_vm1, %v423_v51 }
  0x38   : > { %1372 = vmatmul.mubr.msk.f32.gmra.mxu0 %vm428_vm1, %v1606_v40 }
  0x86   : > { %v908_v54 = vpop.permute.xlu0 %907 }
  0x87   : > { %v930_v55 = vmax.f32 %v1546_v6, %v908_v54 }
  0x88   : > { %v912_v56 = vpop.permute.xlu1 %911 }
  0x89   : > { %949 = vrot.lane.b32.xlu1 %v930_v55, %s1446_s20  ;;  %v932_v61 = vmax.f32 %v1556_v13, %v912_v56 }
  0x8a   : > { %v910_v57 = vpop.permute.xlu0 %909 }
  0x8b   : > { %v931_v59 = vmax.f32 %v1550_v8, %v910_v57 }
  0x8c   : > { %v914_v60 = vpop.permute.xlu1 %913 }
  0x8d   : > { %1042 = vrot.lane.b32.xlu1 %v1282_v58, %s1445_s19  ;;  %951 = vrot.lane.b32.xlu0 %v931_v59, %s1446_s20  ;;  %v933_v1 = vmax.f32 %v1564_v18, %v914_v60 }
  0x8e   : > { %v916_v62 = vpop.permute.xlu0 %915 }
  0x8f   : > { %v934_v63 = vmax.f32 %v1561_v17, %v916_v62 }
  0x90   : > { %v918_v0 = vpop.permute.xlu1 %917 }
  0x91   : > { %957 = vrot.lane.b32.xlu1 %v934_v63, %s1446_s20  ;;  %953 = vrot.lane.b32.xlu0 %v932_v61, %s1446_s20  ;;  %v935_v4 = vmax.f32 %v1582_v29, %v918_v0 }
  0x92   : > { %v920_v2 = vpop.permute.xlu0 %919 }
  0x93   : > { %v936_v3 = vmax.f32 %v1588_v31, %v920_v2 }
  0x94   : > { %v938_v5 = vpop.permute.xlu1 %937 }
  0x95   : > { %961 = vrot.lane.b32.xlu1 %v936_v3, %s1446_s20  ;;  %955 = vrot.lane.b32.xlu0 %v933_v1, %s1446_s20  ;;  %v940_v6 = vmax.f32 %v1606_v40, %v938_v5 }
  0x96   : > { %v906_v8 = vpop.permute.xlu0 %905 }
  0x97   : > { %v929_v9 = vmax.f32 %v1592_v33, %v906_v8 }
  0x98   : > { %v1026_v7 = vpop.permute.xlu1 %1025 }
  0x99   : > { %959 = vrot.lane.b32.xlu0 %v935_v4, %s1446_s20 }
  0x9d   : > { %963 = vrot.lane.b32.xlu0 %v940_v6, %s1446_s20 }
  0xd7   : > { %v1348_v29 = vpop.f32.mrf.mxu1 }
  0xd9   : > { %v632_v40 = vpop.f32.mrf.mxu1 }
  0xdc   : > { %v1332_v19 = vpop.f32.mrf.mxu0 }
  0xdd   : > { %v1351_v49 = vpop.f32.mrf.mxu1 }
  0xde   : > { %v511_v28 = vpop.f32.mrf.mxu0 }
  0xdf   : > { %v642_v57 = vpop.f32.mrf.mxu1 }
  0xe0   : > { %v1335_v39 = vpop.f32.mrf.mxu0 }
  0xe2   : > { %v521_v48 = vpop.f32.mrf.mxu0 }
  0xe4   : > { %v1338_v56 = vpop.f32.mrf.mxu0 }
  0xe6   : > { %v531_v60 = vpop.f32.mrf.mxu0 }
  0xe8   : > { %v1341_v62 = vpop.f32.mrf.mxu0 }
  0xea   : > { %v541_v0 = vpop.f32.mrf.mxu0 }
  0xfb   : > { %v950_v10 = vpop.permute.xlu1 %949 }
  0xfc   : > { %v973_v11 = vmax.f32 %v929_v9, %v950_v10 }
  0xfe   : > { %v1028_v12 = vmul.f32 %v1026_v7, %v973_v11  ;;  %v643_v11 = vadd.f32 %v642_v57, %v521_v48 }
  0xff   : > { %v1043_v13 = vpop.permute.xlu1 %1042  ;;  %v952_v14 = vpop.permute.xlu0 %951 }
 0x100   : > { %v974_v15 = vmax.f32 %v930_v55, %v952_v14  ;;  %v1045_v16 = vadd.f32 %v1043_v13, %v1028_v12  ;;  %v1279_v14 = vld [vmem:[%s1725_s5] ss:$0 sm:$0xff] }
 0x102   : > { %v1029_v17 = vmul.f32 %v1026_v7, %v974_v15  ;;  %v1053_v18 = vmax.f32 %v1045_v16, 0.0 }
 0x103   : > { %v958_v20 = vpop.permute.xlu1 %957  ;;  %v954_v21 = vpop.permute.xlu0 %953 }
 0x104   : > { %v977_v22 = vmax.f32 %v933_v1, %v958_v20  ;;  %v975_v23 = vmax.f32 %v931_v59, %v954_v21  ;;  %1105 = vrot.lane.b32.xlu1 %v1053_v18, %s1447_s23  ;;  %v1046_v24 = vadd.f32 %v1043_v13, %v1029_v17  ;;  %v648_v17 = vadd.f32 %v1351_v49, %v1335_v39 }
 0x106   : > { %v1032_v25 = vmul.f32 %v1026_v7, %v977_v22  ;;  %v1030_v26 = vmul.f32 %v1026_v7, %v975_v23  ;;  %v1054_v27 = vmax.f32 %v1046_v24, 0.0 }
 0x107   : > { %v962_v30 = vpop.permute.xlu1 %961  ;;  %v956_v31 = vpop.permute.xlu0 %955 }
 0x108   : > { %v979_v32 = vmax.f32 %v935_v4, %v962_v30  ;;  %v976_v33 = vmax.f32 %v932_v61, %v956_v31  ;;  %1107 = vrot.lane.b32.xlu0 %v1054_v27, %s1447_s23  ;;  %v1047_v34 = vadd.f32 %v1043_v13, %v1030_v26  ;;  %v1049_v38 = vadd.f32 %v1043_v13, %v1032_v25  ;;  %v1354_v61 = vpop.f32.mrf.mxu1 }
 0x109   : > { %v633_v4 = vadd.f32 %v632_v40, %v511_v28  ;;  %v658_v31 = vadd.f32 %v1354_v61, %v1338_v56 }
 0x10a   : > { %v1034_v35 = vmul.f32 %v1026_v7, %v979_v32  ;;  %v1031_v36 = vmul.f32 %v1026_v7, %v976_v33  ;;  %v1055_v37 = vmax.f32 %v1047_v34, 0.0  ;;  %v1057_v45 = vmax.f32 %v1049_v38, 0.0 }
 0x10b   : > { %v960_v41 = vpop.permute.xlu0 %959 }
 0x10c   : > { %v978_v42 = vmax.f32 %v934_v63, %v960_v41  ;;  %1109 = vrot.lane.b32.xlu1 %v1055_v37, %s1447_s23  ;;  %v1048_v43 = vadd.f32 %v1043_v13, %v1031_v36  ;;  %v1051_v47 = vadd.f32 %v1043_v13, %v1034_v35  ;;  %v652_v63 = vpop.f32.mrf.mxu1 }
 0x10d   : > { %v653_v25 = vadd.f32 %v652_v63, %v531_v60 }
 0x10e   : > { %v1033_v44 = vmul.f32 %v1026_v7, %v978_v42  ;;  %v1056_v46 = vmax.f32 %v1048_v43, 0.0  ;;  %v1059_v54 = vmax.f32 %v1051_v47, 0.0  ;;  %v1357_v1 = vpop.f32.mrf.mxu1 }
 0x10f   : > { %v964_v50 = vpop.permute.xlu0 %963  ;;  %v668_v47 = vadd.f32 %v1357_v1, %v1341_v62 }
 0x110   : > { %v980_v51 = vmax.f32 %v936_v3, %v964_v50  ;;  %1113 = vrot.lane.b32.xlu1 %v1057_v45, %s1447_s23  ;;  %1111 = vrot.lane.b32.xlu0 %v1056_v46, %s1447_s23  ;;  %v1050_v52 = vadd.f32 %v1043_v13, %v1033_v44  ;;  %v662_v2 = vpop.f32.mrf.mxu1  ;;  %v1364_v3 = vpop.f32.mrf.mxu0 }
 0x111   : > { %v663_v39 = vadd.f32 %v662_v2, %v541_v0 }
 0x112   : > { %v1035_v53 = vmul.f32 %v1026_v7, %v980_v51  ;;  %v1058_v55 = vmax.f32 %v1050_v52, 0.0  ;;  %v741_v5 = vpop.f32.mrf.mxu0  ;;  %v1380_v6 = vpop.f32.mrf.mxu1  ;;  %v638_v7 = vadd.f32 %v1348_v29, %v1332_v19  ;;  %v1280_v19 = vld [vmem:[%s1726_s6] ss:$0 sm:$0xff] }
 0x113   : > { %v780_v8 = vadd.f32 %v741_v5, %v633_v4 }
 0x114   : > { %1117 = vrot.lane.b32.xlu1 %v1059_v54, %s1447_s23  ;;  %1115 = vrot.lane.b32.xlu0 %v1058_v55, %s1447_s23  ;;  %v1052_v58 = vadd.f32 %v1043_v13, %v1035_v53  ;;  %v858_v9 = vpop.f32.mrf.mxu1  ;;  %v1367_v10 = vpop.f32.mrf.mxu0  ;;  %v781_v12 = vadd.f32 %v1364_v3, %v638_v7 }
 0x115   : > { %v897_v13 = vadd.f32 %v858_v9, %v780_v8  ;;  %v783_v24 = vadd.f32 %v1367_v10, %v648_v17 }
 0x116   : > { %v1060_v59 = vmax.f32 %v1052_v58, 0.0  ;;  %v751_v15 = vpop.f32.mrf.mxu0  ;;  %v1383_v16 = vpop.f32.mrf.mxu1  ;;  %v898_v18 = vadd.f32 %v1380_v6, %v781_v12 }
 0x117   : > { %v988_v20 = vmul.f32 %v1279_v14, %v897_v13  ;;  %v782_v21 = vadd.f32 %v751_v15, %v643_v11  ;;  %v900_v32 = vadd.f32 %v1383_v16, %v783_v24 }
 0x118   : > { %1119 = vrot.lane.b32.xlu0 %v1060_v59, %s1447_s23  ;;  %v868_v22 = vpop.f32.mrf.mxu1  ;;  %v1370_v23 = vpop.f32.mrf.mxu0  ;;  %v989_v26 = vmul.f32 %v1279_v14, %v898_v18 }
 0x119   : > { %v899_v27 = vadd.f32 %v868_v22, %v782_v21  ;;  %v1003_v28 = vadd.f32 %v1280_v19, %v988_v20  ;;  %v785_v40 = vadd.f32 %v1370_v23, %v658_v31  ;;  %v991_v41 = vmul.f32 %v1279_v14, %v900_v32 }
 0x11a   : > { %v761_v29 = vpop.f32.mrf.mxu0  ;;  %v1386_v30 = vpop.f32.mrf.mxu1  ;;  %v1004_v35 = vadd.f32 %v1280_v19, %v989_v26 }
 0x11b   : > { %v990_v33 = vmul.f32 %v1279_v14, %v899_v27  ;;  %v1011_v34 = vmax.f32 %v1003_v28, 0.0  ;;  %v784_v36 = vadd.f32 %v761_v29, %v653_v25  ;;  %v902_v48 = vadd.f32 %v1386_v30, %v785_v40 }
 0x11c   : > { %v878_v37 = vpop.f32.mrf.mxu1  ;;  %v1373_v38 = vpop.f32.mrf.mxu0  ;;  %v1012_v42 = vmax.f32 %v1004_v35, 0.0  ;;  %v1006_v51 = vadd.f32 %v1280_v19, %v991_v41 }
 0x11d   : > { %v901_v43 = vadd.f32 %v878_v37, %v784_v36  ;;  %v1005_v44 = vadd.f32 %v1280_v19, %v990_v33  ;;  %v993_v54 = vmul.f32 %v1279_v14, %v902_v48  ;;  %v787_v55 = vadd.f32 %v1373_v38, %v668_v47 }
 0x11e   : > { %v771_v45 = vpop.f32.mrf.mxu0  ;;  %v1389_v46 = vpop.f32.mrf.mxu1  ;;  %v1014_v56 = vmax.f32 %v1006_v51, 0.0 }
 0x11f   : > { %v992_v49 = vmul.f32 %v1279_v14, %v901_v43  ;;  %v1013_v50 = vmax.f32 %v1005_v44, 0.0  ;;  %v786_v52 = vadd.f32 %v771_v45, %v663_v39  ;;  %v904_v59 = vadd.f32 %v1389_v46, %v787_v55 }
 0x120   : > { %v888_v53 = vpop.f32.mrf.mxu1  ;;  %v1008_v63 = vadd.f32 %v1280_v19, %v993_v54 }
 0x121   : > { %v903_v57 = vadd.f32 %v888_v53, %v786_v52  ;;  %v1007_v58 = vadd.f32 %v1280_v19, %v992_v49  ;;  %v995_v0 = vmul.f32 %v1279_v14, %v904_v59 }
 0x122   : > { %v1016_v62 = vmax.f32 %v1008_v63, 0.0 }
 0x123   : > { %v994_v60 = vmul.f32 %v1279_v14, %v903_v57  ;;  %v1015_v61 = vmax.f32 %v1007_v58, 0.0  ;;  %v1010_v3 = vadd.f32 %v1280_v19, %v995_v0 }
 0x125   : > { %v1009_v1 = vadd.f32 %v1280_v19, %v994_v60  ;;  %v1018_v4 = vmax.f32 %v1010_v3, 0.0 }
 0x127   : > { %v1017_v2 = vmax.f32 %v1009_v1, 0.0 }
 0x13d   : > { %1061 = vxpose.xlu1.b32.start [1/8] (short) (narrow) %v1011_v34, 16 }
 0x141   : > { %1062 = vxpose.xlu1.b32.cont [2/8] (short) (narrow) %v1012_v42, 16 }
 0x145   : > { %1063 = vxpose.xlu1.b32.cont [3/8] (short) (narrow) %v1013_v50, 16 }
 0x149   : > { %1064 = vxpose.xlu1.b32.cont [4/8] (short) (narrow) %v1014_v56, 16 }
 0x14d   : > { %1065 = vxpose.xlu1.b32.cont [5/8] (short) (narrow) %v1015_v61, 16 }
 0x151   : > { %1066 = vxpose.xlu1.b32.cont [6/8] (short) (narrow) %v1016_v62, 16 }
 0x155   : > { %1067 = vxpose.xlu1.b32.cont [7/8] (short) (narrow) %v1017_v2, 16 }
 0x159   : > { %1068 = vxpose.xlu1.b32.end [8/8] (short) (narrow) %v1018_v4, 16 }
 0x176   : > { %v1106_v5 = vpop.permute.xlu1 %1105 }
 0x177   : > { %1129 = vxpose.xlu0.b32.start [1/8] (short) (narrow) %v1106_v5, 8 }
 0x17a   : > { %v1108_v6 = vpop.permute.xlu0 %1107 }
 0x17b   : > { %1130 = vxpose.xlu0.b32.cont [2/8] (short) (narrow) %v1108_v6, 8 }
 0x17e   : > { %v1110_v7 = vpop.permute.xlu1 %1109 }
 0x17f   : > { %1131 = vxpose.xlu0.b32.cont [3/8] (short) (narrow) %v1110_v7, 8 }
 0x182   : > { %v1112_v8 = vpop.permute.xlu0 %1111  ;;  %v1114_v9 = vpop.permute.xlu1 %1113 }
 0x183   : > { %1132 = vxpose.xlu0.b32.cont [4/8] (short) (narrow) %v1112_v8, 8 }
 0x186   : > { %v1116_v10 = vpop.permute.xlu0 %1115  ;;  %v1118_v11 = vpop.permute.xlu1 %1117 }
 0x187   : > { %1133 = vxpose.xlu0.b32.cont [5/8] (short) (narrow) %v1114_v9, 8 }
 0x18a   : > { %v1120_v12 = vpop.permute.xlu0 %1119 }
 0x18b   : > { %1134 = vxpose.xlu0.b32.cont [6/8] (short) (narrow) %v1116_v10, 8 }
 0x18f   : > { %1135 = vxpose.xlu0.b32.cont [7/8] (short) (narrow) %v1118_v11, 8 }
 0x193   : > { %1136 = vxpose.xlu0.b32.end [8/8] (short) (narrow) %v1120_v12, 8 }
 0x1b9   : > { %v1077_v13 = vpop.trf.xlu1 }
 0x1ba   : > { %1094 = vst.msk [vmem:[%s359_s14] sm:$0xff] %vm1093_vm2, %v1077_v13 }
 0x1bd   : > { %v1078_v14 = vpop.trf.xlu1 }
 0x1be   : > { %1096 = vst.msk [vmem:[%s359_s14 + $0x8] sm:$0xf] %vm1095_vm3, %v1078_v14 }
 0x1f3   : > { %v1145_v15 = vpop.trf.xlu0 }
 0x1f4   : > { %1161 = vst.msk [vmem:[%s359_s14 + $0xc] sm:$0xf] %vm1095_vm3, %v1145_v15 }
 0x1f5 PF: > { %s19_s11 = sadd.s32 1, %s1442_s11   ;;  %s1730_s30 = smov %s1438_s10 }
 0x1f6   : > { %p16_p5 = scmp.ge.s32.totalorder %s19_s11, 4   ;;  %s1731_s10 = smov %s1733_s12 }
 0x1f8   :  { %18 = sbr.rel (!%p16_p5) target bundleno = 2 (0x2), region = 86 }

</bundles_post_ra>
